<compile_context>
chip_gen: v6e
topology: v6e:2x2x1
jax: 0.10.0
libtpu: 0.0.40
codegen_flags: <defaults>
</compile_context>

<pallas_src>
import functools

import jax
import jax.numpy as jnp
from jax import lax
from jax.experimental import pallas as pl
from jax.experimental.pallas import tpu as pltpu


def _round_up(x, m):
    return ((x + m - 1) // m) * m


# ---------------------------------------------------------------------------
# Kernel 1: one-hot MXU gather (small tables), lane-dense packed output.
# ---------------------------------------------------------------------------
def _mf_onehot_kernel(uidx_ref, iidx_ref, utab_ref, itab_ref,
                      uout_ref, iout_ref, *, pack):
    uidx = uidx_ref[...]                      # (tbp, pack) int32
    iidx = iidx_ref[...]                      # (tbp, pack) int32
    tbp = uidx.shape[0]
    num_users = utab_ref.shape[0]
    num_items = itab_ref.shape[0]

    iota_u = lax.broadcasted_iota(jnp.int32, (tbp, num_users), 1)
    iota_i = lax.broadcasted_iota(jnp.int32, (tbp, num_items), 1)

    u_parts = []
    i_parts = []
    for j in range(pack):                     # static, pack = 128 // dim (or 1)
        # One-hot row-selection matrices, fed to the MXU.  Out-of-range /
        # padded indices simply select nothing (zero row) -> never OOB.
        usel = (uidx[:, j:j + 1] == iota_u).astype(utab_ref.dtype)
        isel = (iidx[:, j:j + 1] == iota_i).astype(itab_ref.dtype)
        u_parts.append(jnp.dot(usel, utab_ref[...],
                               preferred_element_type=jnp.float32))
        i_parts.append(jnp.dot(isel, itab_ref[...],
                               preferred_element_type=jnp.float32))

    # Lane-concatenate the `pack` gathered slots -> one dense (tbp, pack*dim)
    # store per output block.
    u_blk = u_parts[0] if pack == 1 else jnp.concatenate(u_parts, axis=1)
    i_blk = i_parts[0] if pack == 1 else jnp.concatenate(i_parts, axis=1)
    uout_ref[...] = u_blk.astype(uout_ref.dtype)
    iout_ref[...] = i_blk.astype(iout_ref.dtype)


def _mf_onehot_path(user_emb, item_emb, uidx, iidx, *, tile_rows):
    B = uidx.shape[0]
    num_users, dim = user_emb.shape
    num_items, _ = item_emb.shape
    out_dtype = user_emb.dtype
    itemsize = jnp.dtype(out_dtype).itemsize

    # Lane-dense packing factor: rows of width `dim` packed per 128-lane row.
    pack = 128 // dim if (dim < 128 and 128 % dim == 0) else 1
    rows = pl.cdiv(B, pack)                       # packed rows needed

    # Packed rows per grid step: big tiles, but keep >=2 steps when possible.
    tbp_target = max(8, _round_up(max(tile_rows // pack, 1), 8))
    tbp = min(tbp_target, max(8, _round_up(pl.cdiv(rows, 2), 8)))
    rows_p = _round_up(rows, tbp)
    b_pad = rows_p * pack
    grid = (rows_p // tbp,)
    lane_out = pack * dim

    if b_pad != B:
        pad = b_pad - B
        uidx = jnp.concatenate([uidx, jnp.zeros((pad,), jnp.int32)])
        iidx = jnp.concatenate([iidx, jnp.zeros((pad,), jnp.int32)])
    uidx2 = uidx.reshape(rows_p, pack)
    iidx2 = iidx.reshape(rows_p, pack)

    # VMEM budget: resident tables (single copy) + pipelined idx/out blocks
    # + one-hot temporaries + slack, clamped well under v7x's 64 MiB.
    table_bytes = (num_users + num_items) * dim * itemsize
    out_block_bytes = 2 * 2 * tbp * max(lane_out, 128) * itemsize
    idx_block_bytes = 2 * 2 * tbp * 128 * 4
    onehot_bytes = 4 * tbp * _round_up(max(num_users, num_items), 128) * 4
    vmem_limit = table_bytes + out_block_bytes + idx_block_bytes + onehot_bytes
    vmem_limit = max(8 << 20, min(int(vmem_limit) + (4 << 20), 48 << 20))

    cost = pl.CostEstimate(
        flops=2 * b_pad * (num_users + num_items) * dim,
        transcendentals=0,
        bytes_accessed=(table_bytes
                        + 2 * b_pad * dim * itemsize    # output writes
                        + 2 * b_pad * 4),               # index reads
    )

    # Whole-table, single-buffered VMEM residency (no per-step re-DMA).
    resident = pl.BlockSpec(memory_space=pltpu.MemorySpace.VMEM)

    u_out, i_out = pl.pallas_call(
        functools.partial(_mf_onehot_kernel, pack=pack),
        grid=grid,
        in_specs=(
            pl.BlockSpec((tbp, pack), lambda i: (i, 0)),   # user ids (blocked)
            pl.BlockSpec((tbp, pack), lambda i: (i, 0)),   # item ids (blocked)
            resident,                                      # user table
            resident,                                      # item table
        ),
        out_specs=(
            pl.BlockSpec((tbp, lane_out), lambda i: (i, 0)),
            pl.BlockSpec((tbp, lane_out), lambda i: (i, 0)),
        ),
        out_shape=(
            jax.ShapeDtypeStruct((rows_p, lane_out), out_dtype),
            jax.ShapeDtypeStruct((rows_p, lane_out), out_dtype),
        ),
        compiler_params=pltpu.CompilerParams(
            dimension_semantics=("parallel",),
            vmem_limit_bytes=vmem_limit,
        ),
        cost_estimate=cost,
    )(uidx2, iidx2, user_emb, item_emb)

    # Undo the lane packing with a free contiguous reshape.
    u_out = u_out.reshape(b_pad, dim)
    i_out = i_out.reshape(b_pad, dim)
    if b_pad != B:  # only pays a slice copy when B is not tile aligned
        u_out = u_out[:B]
        i_out = i_out[:B]
    return u_out, i_out


# ---------------------------------------------------------------------------
# Kernel 2: row-loop gather for bigger (but still VMEM-resident) tables.
# ---------------------------------------------------------------------------
def _mf_rowloop_kernel(uidx_ref, iidx_ref, utab_ref, itab_ref,
                       uout_ref, iout_ref, *, tb):
    base = pl.program_id(0) * tb

    def body(r, carry):
        uout_ref[pl.ds(r, 1), :] = utab_ref[pl.ds(uidx_ref[base + r], 1), :]
        iout_ref[pl.ds(r, 1), :] = itab_ref[pl.ds(iidx_ref[base + r], 1), :]
        return carry

    lax.fori_loop(0, tb, body, 0, unroll=8)


def _mf_rowloop_path(user_emb, item_emb, uidx, iidx, *, tile_rows):
    B = uidx.shape[0]
    num_users, dim = user_emb.shape
    num_items, _ = item_emb.shape
    out_dtype = user_emb.dtype
    itemsize = jnp.dtype(out_dtype).itemsize

    tb = max(8, _round_up(tile_rows, 8))
    tb = min(tb, max(8, _round_up(pl.cdiv(B, 2), 8)))
    b_pad = _round_up(B, tb)
    if b_pad != B:
        pad = b_pad - B
        uidx = jnp.concatenate([uidx, jnp.zeros((pad,), jnp.int32)])
        iidx = jnp.concatenate([iidx, jnp.zeros((pad,), jnp.int32)])
    grid = (b_pad // tb,)

    # TODO(synk): for very large B, chunk the call so the two scalar-prefetched
    # int32[B] index vectors stay within the SMEM budget.
    table_bytes = (num_users + num_items) * dim * itemsize
    out_block_bytes = 2 * 2 * tb * max(dim, 128) * itemsize
    vmem_limit = max(8 << 20,
                     min(int(table_bytes + out_block_bytes) + (4 << 20),
                         48 << 20))

    resident = pl.BlockSpec(memory_space=pltpu.MemorySpace.VMEM)
    grid_spec = pltpu.PrefetchScalarGridSpec(
        num_scalar_prefetch=2,
        grid=grid,
        in_specs=[resident, resident],
        out_specs=[
            pl.BlockSpec((tb, dim), lambda i, u, it: (i, 0)),
            pl.BlockSpec((tb, dim), lambda i, u, it: (i, 0)),
        ],
    )

    u_out, i_out = pl.pallas_call(
        functools.partial(_mf_rowloop_kernel, tb=tb),
        grid_spec=grid_spec,
        out_shape=(
            jax.ShapeDtypeStruct((b_pad, dim), out_dtype),
            jax.ShapeDtypeStruct((b_pad, dim), out_dtype),
        ),
        compiler_params=pltpu.CompilerParams(
            dimension_semantics=("parallel",),
            vmem_limit_bytes=vmem_limit,
        ),
    )(uidx, iidx, user_emb, item_emb)

    if b_pad != B:
        u_out = u_out[:B]
        i_out = i_out[:B]
    return u_out, i_out


# ---------------------------------------------------------------------------
# Wrapper: path selection + index sanitation.
# ---------------------------------------------------------------------------
def mf_forward(user_emb, item_emb, user_idx, item_idx, *,
               tile_rows=512,
               onehot_max_rows=4096,
               vmem_table_budget_bytes=16 * 1024 * 1024):
    """Pallas implementation of MF.forward -> (user_embs, item_embs)."""
    num_users, dim = user_emb.shape
    num_items, dim_i = item_emb.shape
    assert dim_i == dim
    itemsize = jnp.dtype(user_emb.dtype).itemsize

    # A VMEM gather has no runtime bounds check -> clip ids defensively.
    uidx = jnp.clip(user_idx.astype(jnp.int32), 0, num_users - 1)
    iidx = jnp.clip(item_idx.astype(jnp.int32), 0, num_items - 1)

    table_bytes = (num_users + num_items) * dim * itemsize
    if table_bytes > vmem_table_budget_bytes:
        # TODO(synk): add an HBM-resident double-buffered DMA-gather kernel
        # (memory_space=pl.ANY + pltpu.make_async_copy) for tables > VMEM.
        return (jnp.take(user_emb, uidx, axis=0),
                jnp.take(item_emb, iidx, axis=0))

    if max(num_users, num_items) <= onehot_max_rows:
        return _mf_onehot_path(user_emb, item_emb, uidx, iidx,
                               tile_rows=tile_rows)
    return _mf_rowloop_path(user_emb, item_emb, uidx, iidx,
                            tile_rows=tile_rows)


class MFPallas:
    """Deterministic in-script parameter init matching nn.Embedding + N(0, 0.01)."""

    def __init__(self, num_users, num_items, dim, key):
        ku, ki = jax.random.split(key)
        self.user_emb = 0.01 * jax.random.normal(ku, (num_users, dim), jnp.float32)
        self.item_emb = 0.01 * jax.random.normal(ki, (num_items, dim), jnp.float32)

    def forward(self, user_idx, item_idx):
        return mf_forward(self.user_emb, self.item_emb, user_idx, item_idx)


if __name__ == "__main__":
    num_users, num_items, dim = 64, 96, 32
    batch = 32

    key = jax.random.PRNGKey(0)
    k_model, k_u, k_i = jax.random.split(key, 3)

    model = MFPallas(num_users, num_items, dim, k_model)

    user_idx = jax.random.randint(k_u, (batch,), 0, num_users, dtype=jnp.int32)
    item_idx = jax.random.randint(k_i, (batch,), 0, num_items, dtype=jnp.int32)

    user_embs, item_embs = model.forward(user_idx, item_idx)
    jax.block_until_ready((user_embs, item_embs))

    # Verify against plain-JAX reference gather.
    ref_u = model.user_emb[user_idx]
    ref_i = model.item_emb[item_idx]
    assert user_embs.shape == (batch, dim) and item_embs.shape == (batch, dim)
    assert jnp.allclose(user_embs, ref_u, rtol=1e-4, atol=1e-5)
    assert jnp.allclose(item_embs, ref_i, rtol=1e-4, atol=1e-5)

    print("KERNEL_OK")
</pallas_src>

<mosaic_0001>
module attributes {stable_mosaic.version = 11 : i64} {
  func.func @_mf_onehot_kernel(%arg0: i32, %arg1: memref<8x4xi32, #tpu.memory_space<vmem>>, %arg2: memref<8x4xi32, #tpu.memory_space<vmem>>, %arg3: memref<64x32xf32, #tpu.memory_space<vmem>>, %arg4: memref<96x32xf32, #tpu.memory_space<vmem>>, %arg5: memref<8x128xf32, #tpu.memory_space<vmem>>, %arg6: memref<8x128xf32, #tpu.memory_space<vmem>>) attributes {dimension_semantics = [#tpu.dimension_semantics<parallel>], iteration_bounds = array<i64: 1>, scalar_prefetch = 0 : i64, scratch_operands = 0 : i64, tpu.core_type = #tpu.core_type<tc>, window_params = [{transform_indices = @transform_0, window_bounds = array<i64: 8, 4>}, {transform_indices = @transform_1, window_bounds = array<i64: 8, 4>}, {pipeline_mode = #tpu.pipeline_mode<synchronous>, transform_indices = @transform_2, window_bounds = array<i64: 64, 32>}, {pipeline_mode = #tpu.pipeline_mode<synchronous>, transform_indices = @transform_3, window_bounds = array<i64: 96, 32>}, {transform_indices = @transform_4, window_bounds = array<i64: 8, 128>}, {transform_indices = @transform_5, window_bounds = array<i64: 8, 128>}]} {
    %c0 = arith.constant 0 : index
    %c0_0 = arith.constant 0 : index
    %0 = vector.load %arg1[%c0, %c0_0] : memref<8x4xi32, #tpu.memory_space<vmem>>, vector<8x4xi32>
    %c0_1 = arith.constant 0 : index
    %c0_2 = arith.constant 0 : index
    %1 = vector.load %arg2[%c0_1, %c0_2] : memref<8x4xi32, #tpu.memory_space<vmem>>, vector<8x4xi32>
    %2 = tpu.iota {dimensions = array<i32: 1>} : vector<8x64xi32>
    %3 = tpu.iota {dimensions = array<i32: 1>} : vector<8x96xi32>
    %4 = vector.extract_strided_slice %0 {offsets = [0, 0], sizes = [8, 1], strides = [1, 1]} : vector<8x4xi32> to vector<8x1xi32>
    %5 = vector.broadcast %4 : vector<8x1xi32> to vector<8x64xi32>
    %6 = arith.cmpi eq, %5, %2 : vector<8x64xi32>
    %7 = arith.extui %6 : vector<8x64xi1> to vector<8x64xi32>
    %8 = arith.sitofp %7 : vector<8x64xi32> to vector<8x64xf32>
    %9 = vector.extract_strided_slice %1 {offsets = [0, 0], sizes = [8, 1], strides = [1, 1]} : vector<8x4xi32> to vector<8x1xi32>
    %10 = vector.broadcast %9 : vector<8x1xi32> to vector<8x96xi32>
    %11 = arith.cmpi eq, %10, %3 : vector<8x96xi32>
    %12 = arith.extui %11 : vector<8x96xi1> to vector<8x96xi32>
    %13 = arith.sitofp %12 : vector<8x96xi32> to vector<8x96xf32>
    %c0_3 = arith.constant 0 : index
    %c0_4 = arith.constant 0 : index
    %14 = vector.load %arg3[%c0_3, %c0_4] : memref<64x32xf32, #tpu.memory_space<vmem>>, vector<64x32xf32>
    %cst = arith.constant dense<0.000000e+00> : vector<8x32xf32>
    %15 = tpu.matmul %8, %14, %cst {dimension_numbers = #tpu.dot_dimension_numbers<[1], [0], [0], [1], [0, 0, 1, 1], [], []>} : vector<8x64xf32>, vector<64x32xf32>, vector<8x32xf32> -> vector<8x32xf32>
    %c0_5 = arith.constant 0 : index
    %c0_6 = arith.constant 0 : index
    %16 = vector.load %arg4[%c0_5, %c0_6] : memref<96x32xf32, #tpu.memory_space<vmem>>, vector<96x32xf32>
    %cst_7 = arith.constant dense<0.000000e+00> : vector<8x32xf32>
    %17 = tpu.matmul %13, %16, %cst_7 {dimension_numbers = #tpu.dot_dimension_numbers<[1], [0], [0], [1], [0, 0, 1, 1], [], []>} : vector<8x96xf32>, vector<96x32xf32>, vector<8x32xf32> -> vector<8x32xf32>
    %18 = vector.extract_strided_slice %0 {offsets = [0, 1], sizes = [8, 1], strides = [1, 1]} : vector<8x4xi32> to vector<8x1xi32>
    %19 = vector.broadcast %18 : vector<8x1xi32> to vector<8x64xi32>
    %20 = arith.cmpi eq, %19, %2 : vector<8x64xi32>
    %21 = arith.extui %20 : vector<8x64xi1> to vector<8x64xi32>
    %22 = arith.sitofp %21 : vector<8x64xi32> to vector<8x64xf32>
    %23 = vector.extract_strided_slice %1 {offsets = [0, 1], sizes = [8, 1], strides = [1, 1]} : vector<8x4xi32> to vector<8x1xi32>
    %24 = vector.broadcast %23 : vector<8x1xi32> to vector<8x96xi32>
    %25 = arith.cmpi eq, %24, %3 : vector<8x96xi32>
    %26 = arith.extui %25 : vector<8x96xi1> to vector<8x96xi32>
    %27 = arith.sitofp %26 : vector<8x96xi32> to vector<8x96xf32>
    %c0_8 = arith.constant 0 : index
    %c0_9 = arith.constant 0 : index
    %28 = vector.load %arg3[%c0_8, %c0_9] : memref<64x32xf32, #tpu.memory_space<vmem>>, vector<64x32xf32>
    %cst_10 = arith.constant dense<0.000000e+00> : vector<8x32xf32>
    %29 = tpu.matmul %22, %28, %cst_10 {dimension_numbers = #tpu.dot_dimension_numbers<[1], [0], [0], [1], [0, 0, 1, 1], [], []>} : vector<8x64xf32>, vector<64x32xf32>, vector<8x32xf32> -> vector<8x32xf32>
    %c0_11 = arith.constant 0 : index
    %c0_12 = arith.constant 0 : index
    %30 = vector.load %arg4[%c0_11, %c0_12] : memref<96x32xf32, #tpu.memory_space<vmem>>, vector<96x32xf32>
    %cst_13 = arith.constant dense<0.000000e+00> : vector<8x32xf32>
    %31 = tpu.matmul %27, %30, %cst_13 {dimension_numbers = #tpu.dot_dimension_numbers<[1], [0], [0], [1], [0, 0, 1, 1], [], []>} : vector<8x96xf32>, vector<96x32xf32>, vector<8x32xf32> -> vector<8x32xf32>
    %32 = vector.extract_strided_slice %0 {offsets = [0, 2], sizes = [8, 1], strides = [1, 1]} : vector<8x4xi32> to vector<8x1xi32>
    %33 = vector.broadcast %32 : vector<8x1xi32> to vector<8x64xi32>
    %34 = arith.cmpi eq, %33, %2 : vector<8x64xi32>
    %35 = arith.extui %34 : vector<8x64xi1> to vector<8x64xi32>
    %36 = arith.sitofp %35 : vector<8x64xi32> to vector<8x64xf32>
    %37 = vector.extract_strided_slice %1 {offsets = [0, 2], sizes = [8, 1], strides = [1, 1]} : vector<8x4xi32> to vector<8x1xi32>
    %38 = vector.broadcast %37 : vector<8x1xi32> to vector<8x96xi32>
    %39 = arith.cmpi eq, %38, %3 : vector<8x96xi32>
    %40 = arith.extui %39 : vector<8x96xi1> to vector<8x96xi32>
    %41 = arith.sitofp %40 : vector<8x96xi32> to vector<8x96xf32>
    %c0_14 = arith.constant 0 : index
    %c0_15 = arith.constant 0 : index
    %42 = vector.load %arg3[%c0_14, %c0_15] : memref<64x32xf32, #tpu.memory_space<vmem>>, vector<64x32xf32>
    %cst_16 = arith.constant dense<0.000000e+00> : vector<8x32xf32>
    %43 = tpu.matmul %36, %42, %cst_16 {dimension_numbers = #tpu.dot_dimension_numbers<[1], [0], [0], [1], [0, 0, 1, 1], [], []>} : vector<8x64xf32>, vector<64x32xf32>, vector<8x32xf32> -> vector<8x32xf32>
    %c0_17 = arith.constant 0 : index
    %c0_18 = arith.constant 0 : index
    %44 = vector.load %arg4[%c0_17, %c0_18] : memref<96x32xf32, #tpu.memory_space<vmem>>, vector<96x32xf32>
    %cst_19 = arith.constant dense<0.000000e+00> : vector<8x32xf32>
    %45 = tpu.matmul %41, %44, %cst_19 {dimension_numbers = #tpu.dot_dimension_numbers<[1], [0], [0], [1], [0, 0, 1, 1], [], []>} : vector<8x96xf32>, vector<96x32xf32>, vector<8x32xf32> -> vector<8x32xf32>
    %46 = vector.extract_strided_slice %0 {offsets = [0, 3], sizes = [8, 1], strides = [1, 1]} : vector<8x4xi32> to vector<8x1xi32>
    %47 = vector.broadcast %46 : vector<8x1xi32> to vector<8x64xi32>
    %48 = arith.cmpi eq, %47, %2 : vector<8x64xi32>
    %49 = arith.extui %48 : vector<8x64xi1> to vector<8x64xi32>
    %50 = arith.sitofp %49 : vector<8x64xi32> to vector<8x64xf32>
    %51 = vector.extract_strided_slice %1 {offsets = [0, 3], sizes = [8, 1], strides = [1, 1]} : vector<8x4xi32> to vector<8x1xi32>
    %52 = vector.broadcast %51 : vector<8x1xi32> to vector<8x96xi32>
    %53 = arith.cmpi eq, %52, %3 : vector<8x96xi32>
    %54 = arith.extui %53 : vector<8x96xi1> to vector<8x96xi32>
    %55 = arith.sitofp %54 : vector<8x96xi32> to vector<8x96xf32>
    %c0_20 = arith.constant 0 : index
    %c0_21 = arith.constant 0 : index
    %56 = vector.load %arg3[%c0_20, %c0_21] : memref<64x32xf32, #tpu.memory_space<vmem>>, vector<64x32xf32>
    %cst_22 = arith.constant dense<0.000000e+00> : vector<8x32xf32>
    %57 = tpu.matmul %50, %56, %cst_22 {dimension_numbers = #tpu.dot_dimension_numbers<[1], [0], [0], [1], [0, 0, 1, 1], [], []>} : vector<8x64xf32>, vector<64x32xf32>, vector<8x32xf32> -> vector<8x32xf32>
    %c0_23 = arith.constant 0 : index
    %c0_24 = arith.constant 0 : index
    %58 = vector.load %arg4[%c0_23, %c0_24] : memref<96x32xf32, #tpu.memory_space<vmem>>, vector<96x32xf32>
    %cst_25 = arith.constant dense<0.000000e+00> : vector<8x32xf32>
    %59 = tpu.matmul %55, %58, %cst_25 {dimension_numbers = #tpu.dot_dimension_numbers<[1], [0], [0], [1], [0, 0, 1, 1], [], []>} : vector<8x96xf32>, vector<96x32xf32>, vector<8x32xf32> -> vector<8x32xf32>
    %60 = tpu.concatenate %15, %29, %43, %57 in 1 : vector<8x32xf32>, vector<8x32xf32>, vector<8x32xf32>, vector<8x32xf32> -> vector<8x128xf32>
    %61 = tpu.concatenate %17, %31, %45, %59 in 1 : vector<8x32xf32>, vector<8x32xf32>, vector<8x32xf32>, vector<8x32xf32> -> vector<8x128xf32>
    %c0_26 = arith.constant 0 : index
    %c0_27 = arith.constant 0 : index
    %62 = vector.load %arg5[%c0_26, %c0_27] : memref<8x128xf32, #tpu.memory_space<vmem>>, vector<8x128xf32>
    tpu.vector_store %arg5[%c0_26, %c0_27], %60 {strides = array<i32>} : memref<8x128xf32, #tpu.memory_space<vmem>>, vector<8x128xf32>,
    %c0_28 = arith.constant 0 : index
    %c0_29 = arith.constant 0 : index
    %63 = vector.load %arg6[%c0_28, %c0_29] : memref<8x128xf32, #tpu.memory_space<vmem>>, vector<8x128xf32>
    tpu.vector_store %arg6[%c0_28, %c0_29], %61 {strides = array<i32>} : memref<8x128xf32, #tpu.memory_space<vmem>>, vector<8x128xf32>,
    return
  }
  func.func @transform_0(%arg0: i32) -> (i32, i32) {
    %c0_i32 = arith.constant 0 : i32
    %c0_i32_0 = arith.constant 0 : i32
    return %arg0, %c0_i32 : i32, i32
  }
  func.func @transform_1(%arg0: i32) -> (i32, i32) {
    %c0_i32 = arith.constant 0 : i32
    %c0_i32_0 = arith.constant 0 : i32
    return %arg0, %c0_i32 : i32, i32
  }
  func.func @transform_2(%arg0: i32) -> (i32, i32) {
    %c0_i32 = arith.constant 0 : i32
    %c0_i32_0 = arith.constant 0 : i32
    %c0_i32_1 = arith.constant 0 : i32
    return %c0_i32, %c0_i32_0 : i32, i32
  }
  func.func @transform_3(%arg0: i32) -> (i32, i32) {
    %c0_i32 = arith.constant 0 : i32
    %c0_i32_0 = arith.constant 0 : i32
    %c0_i32_1 = arith.constant 0 : i32
    return %c0_i32, %c0_i32_0 : i32, i32
  }
  func.func @transform_4(%arg0: i32) -> (i32, i32) {
    %c0_i32 = arith.constant 0 : i32
    %c0_i32_0 = arith.constant 0 : i32
    return %arg0, %c0_i32 : i32, i32
  }
  func.func @transform_5(%arg0: i32) -> (i32, i32) {
    %c0_i32 = arith.constant 0 : i32
    %c0_i32_0 = arith.constant 0 : i32
    return %arg0, %c0_i32 : i32, i32
  }
}

</mosaic_0001>

<bundles_post_ra>
// kernel: tpu_custom_call.1
= control target key start
LH: loop header
LB: loop body
LE: loop exit
PB: predicated region body
PF: predicated region fallthrough
CT: control target
= control target key end

     0   :  { %11 = vsyncpa [#allocation3], 0  ;;  %v1089_v1 = vmov 0   ;;  %v1090_v3 = vmov 1   ;;  %v1091_v5 = vmov 0.0   ;;  %s1450_s0 = inlined_call_operand.vmem [shape: s32[8,4], index: 0, kind: input, shape index: {}]   ;;  %s1451_s1 = inlined_call_operand.vmem [shape: s32[8,4], index: 1, kind: input, shape index: {}]   ;;  %s1452_s2 = inlined_call_operand.vmem [shape: f32[64,32], index: 2, kind: input, shape index: {}]   ;;  %s1453_s3 = inlined_call_operand.vmem [shape: f32[96,32], index: 3, kind: input, shape index: {}]   ;;  %s1454_s4 = inlined_call_operand.hbm [shape: f32[8,128], index: 4, kind: output, shape index: {0}]   ;;  %s1455_s5 = inlined_call_operand.hbm [shape: f32[8,128], index: 5, kind: output, shape index: {1}]  }
   0x1   :  { %v22_v0 = vld [vmem:[%s1451_s1] sm:$0xff]  ;;  %1039 = vset.pattern.permute.xlu0 %v1089_v1  ;;  %1040 = vset.pattern.permute.xlu1 %v1090_v3  ;;  %v1139_v4 = vld [vmem:[%s1453_s3 + $0x58] sm:$0xff]  ;;  %v1152_v7 = vld [vmem:[%s1453_s3 + $0x50] sm:$0xff] }
   0x2   :  { %v21_v2 = vld [vmem:[%s1450_s0] sm:$0xff]  ;;  %32 = vperm.xlu0 %1039, %v22_v0   ;;  %863 = vmatprep.subr.mxu1 %v1091_v5  ;;  %v1146_v6 = vld [vmem:[%s1452_s2 + $0x38] sm:$0xff]  ;;  %v1158_v8 = vld [vmem:[%s1452_s2 + $0x30] sm:$0xff] }
   0x3   :  { %206 = vperm.xlu1 %1040, %v21_v2   ;;  %844 = vmatprep.subr.mxu0 %v1091_v5  ;;  %v1165_v9 = vld [vmem:[%s1453_s3 + $0x48] sm:$0xff] }
   0x4   :  { %864 = vmatpush3.msra.mxu1 %v1139_v4  ;;  %845 = vmatpush3.msra.mxu0 %v1146_v6  ;;  %v1170_v10 = vld [vmem:[%s1452_s2 + $0x28] sm:$0xff] }
   0x5   :  { %865 = vmatprep.subr.mxu1 %v1091_v5  ;;  %846 = vmatprep.subr.mxu0 %v1091_v5 }
   0x6   :  { %26 = vperm.xlu0 %1039, %v21_v2   ;;  %866 = vmatpush3.msra.mxu1 %v1152_v7 }
   0x7   :  { %212 = vperm.xlu1 %1040, %v22_v0   ;;  %847 = vmatpush3.msra.mxu0 %v1158_v8 }
   0x8   :  { %12 = vsyncpa [#allocation5], 0  ;;  %867 = vmatprep.subr.mxu1 %v1091_v5  ;;  %848 = vmatprep.subr.mxu0 %v1091_v5  ;;  %v1092_v11 = vmov 2   ;;  %v1093_v12 = vmov 3   ;;  %v1181_v13 = vld [vmem:[%s1453_s3 + $0x40] sm:$0xff]  ;;  %v1196_v15 = vld [vmem:[%s1453_s3 + $0x38] sm:$0xff]  ;;  %v23_v27 = vlaneseq }
   0x9   :  { %868 = vmatpush3.msra.mxu1 %v1165_v9  ;;  %849 = vmatpush3.msra.mxu0 %v1170_v10  ;;  %v1186_v14 = vld [vmem:[%s1452_s2 + $0x20] sm:$0xff]  ;;  %v1202_v16 = vld [vmem:[%s1452_s2 + $0x18] sm:$0xff]  ;;  %v1207_v17 = vld [vmem:[%s1453_s3 + $0x30] sm:$0xff]  ;;  %vm1094_vm0 = vmmov 0   ;;  %vm131_vm1 = vcmask 785408   ;;  %vm45_vm3 = vcmask 523264  }
   0xa   :  { %1041 = vset.pattern.permute.xlu0 %v1092_v11  ;;  %869 = vmatprep.subr.mxu1 %v1091_v5  ;;  %v1212_v18 = vld [vmem:[%s1452_s2 + $0x10] sm:$0xff]  ;;  %v1220_v19 = vld [vmem:[%s1453_s3 + $0x28] sm:$0xff]  ;;  %v1234_v21 = vld [vmem:[%s1453_s3 + $0x20] sm:$0xff]  ;;  %v1282_v28 = vand.u32 127, %v23_v27  ;;  %s1096_s7 = smov 64   ;;  %s1097_s8 = smov 96  }
   0xb   :  { %1042 = vset.pattern.permute.xlu1 %v1093_v12  ;;  %364 = vperm.xlu0 %1041, %v21_v2   ;;  %v1228_v20 = vld [vmem:[%s1452_s2 + $0x8] sm:$0xff]  ;;  %v1243_v22 = vld [vmem:[%s1452_s2] sm:$0xff]  ;;  %v1249_v23 = vld [vmem:[%s1453_s3 + $0x18] sm:$0xff]  ;;  %vm691_vm11 = vcmask 261120   ;;  %s1098_s9 = smov [#allocation2]  }
   0xc   :  { %522 = vperm.xlu1 %1042, %v21_v2   ;;  %850 = vmatprep.subr.mxu0 %v1091_v5  ;;  %v1258_v24 = vld [vmem:[%s1453_s3 + $0x10] sm:$0xff]  ;;  %v1268_v25 = vld [vmem:[%s1453_s3 + $0x8] sm:$0xff]  ;;  %v1276_v26 = vld [vmem:[%s1453_s3] sm:$0xff]  ;;  %s1095_s3 = smov 32   ;;  %s718_s10 = sshll.u32 %s1098_s9, 4  ;;  %s719_s10 = int_to_ptr.vmem [resolvable:$true] %s718_s10 }
   0xd   :  { %870 = vmatpush3.msra.mxu1 %v1181_v13  ;;  %851 = vmatpush3.msra.mxu0 %v1186_v14  ;;  %s1045_s11 = scalar_lea.vmem %s719_s10, 128  ;;  %p1050_p1 = scmp.lt.s32.totalorder %s719_s10, %s719_s10 }
   0xe   :  { %871 = vmatprep.subr.mxu1 %v1091_v5  ;;  %852 = vmatprep.subr.mxu0 %v1091_v5  ;;  %p1046_p0 = scmp.ne.s32.totalorder %s719_s10, %s1045_s11  ;;  %p1051_p2 = scmp.lt.s32.totalorder %s1045_s11, %s1045_s11 }
   0xf   :  { %1044 = vset.pattern.permute.xlu0 %v1093_v12  ;;  %872 = vmatpush3.msra.mxu1 %v1196_v15 }
  0x10   :  { %1043 = vset.pattern.permute.xlu1 %v1092_v11  ;;  %528 = vperm.xlu0 %1044, %v22_v0   ;;  %p1052_p3 = por %p1051_p2, %p1050_p1 }
  0x11   :  { %370 = vperm.xlu1 %1043, %v22_v0   ;;  %853 = vmatpush3.msra.mxu0 %v1202_v16 }
  0x12   :  { %873 = vmatprep.subr.mxu1 %v1091_v5  ;;  %854 = vmatprep.subr.mxu0 %v1091_v5  ;;  %p1053_p4 = pnand %p1052_p3, %p1046_p0 }
  0x13   :  { %874 = vmatpush3.msra.mxu1 %v1207_v17  ;;  %855 = vmatpush3.msra.mxu0 %v1212_v18 }
  0x14   :  { %875 = vmatprep.subr.mxu1 %v1091_v5  ;;  %856 = vmatprep.subr.mxu0 %v1091_v5 }
  0x15   :  { %876 = vmatpush3.msra.mxu1 %v1220_v19  ;;  %887 = vmatprep.mubr.msk.f32.mxu1 %vm1094_vm0, %v1091_v5 }
  0x16   :  { %877 = vmatprep.subr.mxu1 %v1091_v5  ;;  %857 = vmatpush3.msra.mxu0 %v1228_v20 }
  0x17   :  { %878 = vmatpush3.msra.mxu1 %v1234_v21  ;;  %858 = vmatprep.subr.mxu0 %v1091_v5 }
  0x18   :  { %879 = vmatprep.subr.mxu1 %v1091_v5  ;;  %859 = vmatpush3.msra.mxu0 %v1243_v22 }
  0x19   :  { %880 = vmatpush3.msra.mxu1 %v1249_v23  ;;  %860 = vmatprep.mubr.msk.f32.mxu0 %vm1094_vm0, %v1091_v5 }
  0x1a   :  { %881 = vmatprep.subr.mxu1 %v1091_v5  ;;  %890 = vmatprep.subr.mxu0 %v1091_v5 }
  0x1b   :  { %882 = vmatpush3.msra.mxu1 %v1258_v24 }
  0x1c   :  { %883 = vmatprep.subr.mxu1 %v1091_v5 }
  0x1d   :  { %884 = vmatpush3.msra.mxu1 %v1268_v25 }
  0x1e   :  { %885 = vmatprep.subr.mxu1 %v1091_v5 }
  0x1f   :  { %886 = vmatpush3.msra.mxu1 %v1276_v26 }
  0x20   :  { %909 = vmatprep.subr.mxu1 %v1091_v5 }
  0x7d   :  { %v33_v29 = vpop.permute.xlu0 %32 }
  0x7e   :  { %vm34_vm2 = vcmp.eq.s32.totalorder %v33_v29, %v1282_v28  ;;  %v207_v33 = vpop.permute.xlu1 %206 }
  0x7f   :  { %v741_v30 = vsel %vm34_vm2, 1.0, %v1091_v5  ;;  %vm208_vm5 = vcmp.eq.s32.totalorder %v207_v33, %v1282_v28 }
  0x80   :  { %888 = vmatmul.mubr.msk.f32.vlgmr.msra.gmra.mxu1 %vm131_vm1, %v741_v30  ;;  %v744_v34 = vsel %vm208_vm5, 1.0, %v1091_v5 }
  0x81   :  { %910 = vmatpush3.msra.mxu1 %v1139_v4  ;;  %v27_v31 = vpop.permute.xlu0 %26  ;;  %933 = vmatprep.mubr.msk.f32.mxu1 %vm1094_vm0, %v1091_v5 }
  0x82   :  { %911 = vmatprep.subr.mxu1 %v1091_v5  ;;  %vm28_vm4 = vcmp.eq.s32.totalorder %v27_v31, %v1282_v28  ;;  %v213_v35 = vpop.permute.xlu1 %212 }
  0x83   :  { %v740_v32 = vsel %vm28_vm4, 1.0, %v1091_v5  ;;  %912 = vmatpush3.msra.mxu1 %v1152_v7  ;;  %vm214_vm6 = vcmp.eq.s32.totalorder %v213_v35, %v1282_v28 }
  0x84   :  { %913 = vmatprep.subr.mxu1 %v1091_v5  ;;  %861 = vmatmul.mubr.msk.f32.vlgmr.msra.gmra.mxu0 %vm45_vm3, %v740_v32  ;;  %v745_v36 = vsel %vm214_vm6, 1.0, %v1091_v5 }
  0x85   :  { %891 = vmatpush3.msra.mxu0 %v1146_v6  ;;  %914 = vmatpush3.msra.mxu1 %v1165_v9 }
  0x86   :  { %892 = vmatprep.subr.mxu0 %v1091_v5  ;;  %915 = vmatprep.subr.mxu1 %v1091_v5  ;;  %v365_v37 = vpop.permute.xlu0 %364 }
  0x87   :  { %893 = vmatpush3.msra.mxu0 %v1158_v8  ;;  %916 = vmatpush3.msra.mxu1 %v1181_v13  ;;  %vm366_vm7 = vcmp.eq.s32.totalorder %v365_v37, %v1282_v28  ;;  %v523_v38 = vpop.permute.xlu1 %522 }
  0x88   :  { %894 = vmatprep.subr.mxu0 %v1091_v5  ;;  %917 = vmatprep.subr.mxu1 %v1091_v5  ;;  %v748_v39 = vsel %vm366_vm7, 1.0, %v1091_v5  ;;  %vm524_vm8 = vcmp.eq.s32.totalorder %v523_v38, %v1282_v28 }
  0x89   :  { %895 = vmatpush3.msra.mxu0 %v1170_v10  ;;  %918 = vmatpush3.msra.mxu1 %v1196_v15  ;;  %v752_v40 = vsel %vm524_vm8, 1.0, %v1091_v5 }
  0x8a   :  { %896 = vmatprep.subr.mxu0 %v1091_v5  ;;  %919 = vmatprep.subr.mxu1 %v1091_v5 }
  0x8b   :  { %897 = vmatpush3.msra.mxu0 %v1186_v14  ;;  %920 = vmatpush3.msra.mxu1 %v1207_v17  ;;  %v529_v42 = vpop.permute.xlu0 %528 }
  0x8c   :  { %898 = vmatprep.subr.mxu0 %v1091_v5  ;;  %921 = vmatprep.subr.mxu1 %v1091_v5  ;;  %v371_v41 = vpop.permute.xlu1 %370  ;;  %vm530_vm10 = vcmp.eq.s32.totalorder %v529_v42, %v1282_v28 }
  0x8d   :  { %899 = vmatpush3.msra.mxu0 %v1202_v16  ;;  %922 = vmatpush3.msra.mxu1 %v1220_v19  ;;  %vm372_vm9 = vcmp.eq.s32.totalorder %v371_v41, %v1282_v28  ;;  %v753_v44 = vsel %vm530_vm10, 1.0, %v1091_v5 }
  0x8e   :  { %923 = vmatprep.subr.mxu1 %v1091_v5  ;;  %900 = vmatprep.subr.mxu0 %v1091_v5  ;;  %v749_v43 = vsel %vm372_vm9, 1.0, %v1091_v5 }
  0x8f   :  { %901 = vmatpush3.msra.mxu0 %v1212_v18  ;;  %924 = vmatpush3.msra.mxu1 %v1234_v21 }
  0x90   :  { %902 = vmatprep.subr.mxu0 %v1091_v5  ;;  %925 = vmatprep.subr.mxu1 %v1091_v5 }
  0x91   :  { %903 = vmatpush3.msra.mxu0 %v1228_v20  ;;  %926 = vmatpush3.msra.mxu1 %v1249_v23 }
  0x92   :  { %927 = vmatprep.subr.mxu1 %v1091_v5  ;;  %904 = vmatprep.subr.mxu0 %v1091_v5 }
  0x93   :  { %905 = vmatpush3.msra.mxu0 %v1243_v22  ;;  %906 = vmatprep.mubr.msk.f32.mxu0 %vm1094_vm0, %v1091_v5 }
  0x94   :  { %928 = vmatpush3.msra.mxu1 %v1258_v24  ;;  %907 = vmatmul.mubr.msk.f32.vlgmr.msra.gmra.mxu0 %vm45_vm3, %v744_v34 }
  0x95   :  { %929 = vmatprep.subr.mxu1 %v1091_v5  ;;  %936 = vmatprep.subr.mxu0 %v1091_v5 }
  0x96   :  { %930 = vmatpush3.msra.mxu1 %v1268_v25  ;;  %937 = vmatpush3.msra.mxu0 %v1146_v6 }
  0x97   :  { %931 = vmatprep.subr.mxu1 %v1091_v5  ;;  %938 = vmatprep.subr.mxu0 %v1091_v5 }
  0x98   :  { %932 = vmatpush3.msra.mxu1 %v1276_v26  ;;  %939 = vmatpush3.msra.mxu0 %v1158_v8 }
  0x99   :  { %934 = vmatmul.mubr.msk.f32.vlgmr.msra.gmra.mxu1 %vm131_vm1, %v745_v36  ;;  %940 = vmatprep.subr.mxu0 %v1091_v5 }
  0x9a   :  { %982 = vmatprep.subr.mxu1 %v1091_v5  ;;  %941 = vmatpush3.msra.mxu0 %v1170_v10 }
  0x9b   :  { %983 = vmatpush3.msra.mxu1 %v1146_v6  ;;  %942 = vmatprep.subr.mxu0 %v1091_v5 }
  0x9c   :  { %984 = vmatprep.subr.mxu1 %v1091_v5  ;;  %943 = vmatpush3.msra.mxu0 %v1186_v14 }
  0x9d   :  { %985 = vmatpush3.msra.mxu1 %v1158_v8  ;;  %944 = vmatprep.subr.mxu0 %v1091_v5 }
  0x9e   :  { %986 = vmatprep.subr.mxu1 %v1091_v5  ;;  %945 = vmatpush3.msra.mxu0 %v1202_v16 }
  0x9f   :  { %987 = vmatpush3.msra.mxu1 %v1170_v10  ;;  %946 = vmatprep.subr.mxu0 %v1091_v5 }
  0xa0   :  { %988 = vmatprep.subr.mxu1 %v1091_v5  ;;  %947 = vmatpush3.msra.mxu0 %v1212_v18 }
  0xa1   :  { %989 = vmatpush3.msra.mxu1 %v1186_v14  ;;  %948 = vmatprep.subr.mxu0 %v1091_v5 }
  0xa2   :  { %990 = vmatprep.subr.mxu1 %v1091_v5  ;;  %949 = vmatpush3.msra.mxu0 %v1228_v20 }
  0xa3   :  { %991 = vmatpush3.msra.mxu1 %v1202_v16  ;;  %950 = vmatprep.subr.mxu0 %v1091_v5 }
  0xa4   :  { %992 = vmatprep.subr.mxu1 %v1091_v5  ;;  %951 = vmatpush3.msra.mxu0 %v1243_v22 }
  0xa5   :  { %952 = vmatprep.mubr.msk.f32.mxu0 %vm1094_vm0, %v1091_v5  ;;  %993 = vmatpush3.msra.mxu1 %v1212_v18 }
  0xa6   :  { %953 = vmatmul.mubr.msk.f32.vlgmr.msra.gmra.mxu0 %vm45_vm3, %v748_v39  ;;  %955 = vmatprep.subr.mxu0 %v1091_v5 }
  0xa7   :  { %994 = vmatprep.subr.mxu1 %v1091_v5  ;;  %956 = vmatpush3.msra.mxu0 %v1139_v4 }
  0xa8   :  { %995 = vmatpush3.msra.mxu1 %v1228_v20  ;;  %957 = vmatprep.subr.mxu0 %v1091_v5 }
  0xa9   :  { %996 = vmatprep.subr.mxu1 %v1091_v5  ;;  %958 = vmatpush3.msra.mxu0 %v1152_v7 }
  0xaa   :  { %997 = vmatpush3.msra.mxu1 %v1243_v22  ;;  %998 = vmatprep.mubr.msk.f32.mxu1 %vm1094_vm0, %v1091_v5 }
  0xab   :  { %959 = vmatprep.subr.mxu0 %v1091_v5  ;;  %999 = vmatmul.mubr.msk.f32.vlgmr.msra.gmra.mxu1 %vm45_vm3, %v752_v40 }
  0xac   :  { %1001 = vmatprep.subr.mxu1 %v1091_v5  ;;  %960 = vmatpush3.msra.mxu0 %v1165_v9 }
  0xad   :  { %1002 = vmatpush3.msra.mxu1 %v1139_v4  ;;  %961 = vmatprep.subr.mxu0 %v1091_v5 }
  0xae   :  { %1003 = vmatprep.subr.mxu1 %v1091_v5  ;;  %962 = vmatpush3.msra.mxu0 %v1181_v13 }
  0xaf   :  { %1004 = vmatpush3.msra.mxu1 %v1152_v7  ;;  %963 = vmatprep.subr.mxu0 %v1091_v5 }
  0xb0   :  { %1005 = vmatprep.subr.mxu1 %v1091_v5  ;;  %964 = vmatpush3.msra.mxu0 %v1196_v15 }
  0xb1   :  { %1006 = vmatpush3.msra.mxu1 %v1165_v9  ;;  %965 = vmatprep.subr.mxu0 %v1091_v5 }
  0xb2   :  { %1007 = vmatprep.subr.mxu1 %v1091_v5  ;;  %966 = vmatpush3.msra.mxu0 %v1207_v17 }
  0xb3   :  { %1008 = vmatpush3.msra.mxu1 %v1181_v13  ;;  %967 = vmatprep.subr.mxu0 %v1091_v5 }
  0xb4   :  { %1009 = vmatprep.subr.mxu1 %v1091_v5  ;;  %968 = vmatpush3.msra.mxu0 %v1220_v19 }
  0xb5   :  { %1010 = vmatpush3.msra.mxu1 %v1196_v15  ;;  %969 = vmatprep.subr.mxu0 %v1091_v5 }
  0xb6   :  { %1011 = vmatprep.subr.mxu1 %v1091_v5  ;;  %970 = vmatpush3.msra.mxu0 %v1234_v21 }
  0xb7   :  { %1012 = vmatpush3.msra.mxu1 %v1207_v17  ;;  %971 = vmatprep.subr.mxu0 %v1091_v5 }
  0xb8   :  { %1013 = vmatprep.subr.mxu1 %v1091_v5  ;;  %972 = vmatpush3.msra.mxu0 %v1249_v23 }
  0xb9   :  { %1014 = vmatpush3.msra.mxu1 %v1220_v19  ;;  %973 = vmatprep.subr.mxu0 %v1091_v5 }
  0xba   :  { %1015 = vmatprep.subr.mxu1 %v1091_v5  ;;  %974 = vmatpush3.msra.mxu0 %v1258_v24 }
  0xbb   :  { %1016 = vmatpush3.msra.mxu1 %v1234_v21  ;;  %975 = vmatprep.subr.mxu0 %v1091_v5 }
  0xbc   :  { %1017 = vmatprep.subr.mxu1 %v1091_v5  ;;  %976 = vmatpush3.msra.mxu0 %v1268_v25 }
  0xbd   :  { %1018 = vmatpush3.msra.mxu1 %v1249_v23  ;;  %977 = vmatprep.subr.mxu0 %v1091_v5 }
  0xbe   :  { %1019 = vmatprep.subr.mxu1 %v1091_v5  ;;  %978 = vmatpush3.msra.mxu0 %v1276_v26 }
  0xbf   :  { %979 = vmatprep.mubr.msk.f32.mxu0 %vm1094_vm0, %v1091_v5  ;;  %1020 = vmatpush3.msra.mxu1 %v1258_v24 }
  0xc0   :  { %980 = vmatmul.mubr.msk.f32.vlgmr.msra.gmra.mxu0 %vm131_vm1, %v749_v43  ;;  %1021 = vmatprep.subr.mxu1 %v1091_v5 }
  0xc1   :  { %1022 = vmatpush3.msra.mxu1 %v1268_v25  ;;  %1025 = vmatprep.mubr.msk.f32.mxu1 %vm1094_vm0, %v1091_v5 }
  0xc2   :  { %1023 = vmatprep.subr.mxu1 %v1091_v5 }
  0xc3   :  { %1024 = vmatpush3.msra.mxu1 %v1276_v26 }
  0xc4   :  { %1026 = vmatmul.mubr.msk.f32.vlgmr.msra.gmra.mxu1 %vm131_vm1, %v753_v44 }
 0x140   :  { %v201_v45 = vpop.f32.mrf.mxu1 }
 0x142   :  { %v889_v46 = vpop.f32.mrf.mxu1 }
 0x144   :  { %v115_v47 = vpop.f32.mrf.mxu0 }
 0x146   :  { %v862_v48 = vpop.f32.mrf.mxu0 }
 0x154   :  { %v286_v49 = vpop.f32.mrf.mxu0 }
 0x155   :  { %680 = vrot.lane.b32.xlu1 %v286_v49, %s1095_s3 }
 0x156   :  { %v908_v50 = vpop.f32.mrf.mxu0 }
 0x159   :  { %v359_v51 = vpop.f32.mrf.mxu1 }
 0x15a   :  { %696 = vrot.lane.b32.xlu1 %v359_v51, %s1095_s3 }
 0x15b   :  { %v935_v52 = vpop.f32.mrf.mxu1 }
 0x166   :  { %v444_v53 = vpop.f32.mrf.mxu0 }
 0x167   :  { %684 = vrot.lane.b32.xlu0 %v444_v53, %s1096_s7 }
 0x168   :  { %v954_v54 = vpop.f32.mrf.mxu0 }
 0x16b   :  { %v602_v55 = vpop.f32.mrf.mxu1 }
 0x16c   :  { %688 = vrot.lane.b32.xlu0 %v602_v55, %s1097_s8 }
 0x16d   :  { %v1000_v56 = vpop.f32.mrf.mxu1 }
 0x180   :  { %v517_v57 = vpop.f32.mrf.mxu0 }
 0x181   :  { %700 = vrot.lane.b32.xlu1 %v517_v57, %s1096_s7 }
 0x182   :  { %v981_v58 = vpop.f32.mrf.mxu0 }
 0x184   :  { %v675_v59 = vpop.f32.mrf.mxu1 }
 0x185   :  { %704 = vrot.lane.b32.xlu1 %v675_v59, %s1097_s8 }
 0x186   :  { %v1027_v60 = vpop.f32.mrf.mxu1 }
 0x1c7   :  { %v681_v62 = vpop.permute.xlu1 %680 }
 0x1c8   :  { %v692_v63 = vsel %vm691_vm11, %v115_v47, %v681_v62 }
 0x1d9   :  { %v685_v61 = vpop.permute.xlu0 %684 }
 0x1da   :  { %v693_v0 = vsel %vm45_vm3, %v692_v63, %v685_v61 }
 0x1de   :  { %v689_v1 = vpop.permute.xlu0 %688 }
 0x1df   :  { %v694_v2 = vsel %vm131_vm1, %v693_v0, %v689_v1 }
 0x1e0   :  { %710 = vst [vmem:[#allocation2] sm:$0xff] %v694_v2 }
 0x1e1   :  { %1056 = shalt.err (!%p1053_p4)
}
 0x1e2   :  { %721 = dma.vmem_to_hbm [thread:$0]  %s719_s10, 128, %s1454_s4, [#allocation3]   ;;  %v697_v3 = vpop.permute.xlu1 %696 }
 0x1e3   :  { %s1099_s14 = smov [#allocation4]   ;;  %v707_v5 = vsel %vm691_vm11, %v201_v45, %v697_v3 }
 0x1e4   :  { %s728_s15 = sshll.u32 %s1099_s14, 4  ;;  %s729_s15 = int_to_ptr.vmem [resolvable:$true] %s728_s15 }
 0x1e5   :  { %s1065_s16 = scalar_lea.vmem %s729_s15, 128  ;;  %p1070_p6 = scmp.lt.s32.totalorder %s729_s15, %s729_s15 }
 0x1e6   :  { %p1066_p5 = scmp.ne.s32.totalorder %s729_s15, %s1065_s16  ;;  %p1071_p7 = scmp.lt.s32.totalorder %s1065_s16, %s1065_s16 }
 0x1e8   :  { %p1072_p8 = por %p1071_p7, %p1070_p6 }
 0x1ea   :  { %p1073_p9 = pnand %p1072_p8, %p1066_p5 }
 0x1f3   :  { %v701_v4 = vpop.permute.xlu1 %700 }
 0x1f4   :  { %v708_v6 = vsel %vm45_vm3, %v707_v5, %v701_v4 }
 0x1f7   :  { %v705_v7 = vpop.permute.xlu1 %704 }
 0x1f8   :  { %v709_v8 = vsel %vm131_vm1, %v708_v6, %v705_v7 }
 0x1f9   :  { %711 = vst [vmem:[#allocation4] sm:$0xff] %v709_v8 }
 0x1fa   :  { %1076 = shalt.err (!%p1073_p9)
}
 0x1fb   :  { %731 = dma.vmem_to_hbm [thread:$0]  %s729_s15, 128, %s1455_s5, [#allocation5]  }
 0x1fc   :  { %1085 = dma.done.wait [#allocation3], 128  }
 0x1fd   :  { %1086 = vsyncadd [#allocation3], 4294967168 }
 0x1fe   :  { %1087 = dma.done.wait [#allocation5], 128  }
 0x1ff   :  { %1088 = vsyncadd [#allocation5], 4294967168 }
 0x200   :  { %738 = vsyncpa [#allocation3], 1 }
 0x201   :  { %739 = vsyncpa [#allocation5], 1 }

</bundles_post_ra>
